<compile_context>
chip_gen: v5e
topology: v5e:2x2
jax: 0.10.0
libtpu: 0.0.40
codegen_flags: <defaults>
</compile_context>

<pallas_src>
import jax
import jax.numpy as jnp
import numpy as np
from jax.experimental import pallas as pl
from jax.experimental.pallas import tpu as pltpu

# Problem sizes (DownSample(in_channels=4, out_channels=8) on 16x16 images).
N = 2
CIN = 4
COUT = 8
H = W = 16

HP, WP = H + 2, W + 2            # zero-padded grid (torch padding=1)
S = HP * WP                      # flattened padded grid size = 324
SW = 384                         # per-batch strip width (next mult of 128 >= S)
NTOT = N * SW                    # working lanes, batch folded into lanes = 768

CINP = 8                         # CIN padded to a full sublane group
K1 = 9 * CINP                    # conv1 contraction size (stacked taps)        = 72
K2 = 9 * COUT + CINP             # conv2 contraction size (+ padded identity)   = 80

TAP_OFFSETS = tuple((ky - 1) * WP + (kx - 1) for ky in range(3) for kx in range(3))


def _tap(v, off):
    """Lane-shift so lane j holds v[:, j + off].

    Circular over the 768-lane axis; wrapped lanes only ever feed
    non-interior / padding output positions that the wrapper discards.
    """
    if off == 0:
        return v
    return pltpu.roll(v, (-off) % NTOT, axis=1)


def double_conv_pool_kernel(x_ref, mask_ref, w1_ref, b1_ref, w2_ref, b2_ref,
                            down_ref, pool_ref):
    x = x_ref[...]               # (CINP, NTOT); channels 4..7 are zero rows
    mask = mask_ref[...]         # (1, NTOT); 1.0 on interior lanes, else 0.0

    # ---- conv1: one stacked-tap matmul (COUT, 72) @ (72, NTOT) on the MXU ----
    rhs1 = jnp.concatenate([_tap(x, off) for off in TAP_OFFSETS], axis=0)
    acc1 = jnp.dot(w1_ref[...], rhs1, preferred_element_type=jnp.float32)
    h1 = jnp.maximum(acc1 + b1_ref[...], 0.0) * mask   # == torch zero padding of conv2 input

    # ---- conv2 + fused 1x1 identity: one matmul (COUT, 80) @ (80, NTOT) ----
    # RHS = 9 rolled copies of h1 + centre-tap x rows; identity bias folded in b2.
    rhs2 = jnp.concatenate([_tap(h1, off) for off in TAP_OFFSETS] + [x], axis=0)
    acc2 = jnp.dot(w2_ref[...], rhs2, preferred_element_type=jnp.float32)
    down = jnp.maximum(acc2 + b2_ref[...], 0.0)
    down_ref[...] = down                               # lane-dense (COUT, 768)

    # ---- fused 2x2 / stride-2 max-pool (window max at every lane) ----
    # Stride-2 anchor pick / NCHW crop is wrapper-side layout plumbing.
    b = _tap(down, 1)
    c = _tap(down, WP)
    d = _tap(down, WP + 1)
    pool_ref[...] = jnp.maximum(jnp.maximum(down, b), jnp.maximum(c, d))


def _interior_mask():
    j = np.arange(SW)
    col = j % WP
    interior = (j < S) & (j >= WP) & (j < S - WP) & (col >= 1) & (col <= WP - 2)
    return np.tile(interior.astype(np.float32), N).reshape(1, NTOT)


_MASK_NP = _interior_mask()


@jax.jit
def downsample_forward(x, w1, b1, w2, b2, wi, bi):
    # --- layout plumbing: zero-pad spatially, flatten, fold batch into lanes ---
    xp = jnp.pad(x, ((0, 0), (0, 0), (1, 1), (1, 1)))              # (N, CIN, HP, WP)
    xf = jnp.pad(xp.reshape(N, CIN, S), ((0, 0), (0, 0), (0, SW - S)))
    x_flat = xf.transpose(1, 0, 2).reshape(CIN, NTOT)
    x_flat = jnp.pad(x_flat, ((0, CINP - CIN), (0, 0)))            # (8, 768)

    # --- weights: taps stacked on the contraction axis in 8-row blocks ---
    w1p = jnp.pad(w1, ((0, 0), (0, CINP - CIN), (0, 0), (0, 0)))   # (COUT, 8, 3, 3)
    w1s = jnp.transpose(w1p, (0, 2, 3, 1)).reshape(COUT, K1)       # (COUT, 72)
    w2s = jnp.concatenate(
        [jnp.transpose(w2, (0, 2, 3, 1)).reshape(COUT, 9 * COUT),
         jnp.pad(wi.reshape(COUT, CIN), ((0, 0), (0, CINP - CIN)))],
        axis=1)                                                    # (COUT, 80)
    b1c = b1.reshape(COUT, 1)
    b2c = (b2 + bi).reshape(COUT, 1)                               # identity bias folded
    mask = jnp.asarray(_MASK_NP)

    down_flat, pool_flat = pl.pallas_call(
        double_conv_pool_kernel,
        out_shape=(jax.ShapeDtypeStruct((COUT, NTOT), jnp.float32),
                   jax.ShapeDtypeStruct((COUT, NTOT), jnp.float32)),
        grid_spec=pltpu.PrefetchScalarGridSpec(
            num_scalar_prefetch=0,
            grid=(1,),
            in_specs=[
                pl.BlockSpec((CINP, NTOT), lambda i: (0, 0)),
                pl.BlockSpec((1, NTOT), lambda i: (0, 0)),
                pl.BlockSpec((COUT, K1), lambda i: (0, 0)),
                pl.BlockSpec((COUT, 1), lambda i: (0, 0)),
                pl.BlockSpec((COUT, K2), lambda i: (0, 0)),
                pl.BlockSpec((COUT, 1), lambda i: (0, 0)),
            ],
            out_specs=[
                pl.BlockSpec((COUT, NTOT), lambda i: (0, 0)),
                pl.BlockSpec((COUT, NTOT), lambda i: (0, 0)),
            ],
        ),
        compiler_params=pltpu.CompilerParams(dimension_semantics=("arbitrary",)),
    )(x_flat, mask, w1s, b1c, w2s, b2c)

    # --- un-flatten (layout plumbing): (COUT, N*SW) -> (N, COUT, HP, WP) ---
    def unflatten(a):
        return (a.reshape(COUT, N, SW)[:, :, :S]
                 .reshape(COUT, N, HP, WP).transpose(1, 0, 2, 3))

    down = unflatten(down_flat)[:, :, 1:H + 1, 1:W + 1]             # (N, COUT, H, W)
    pooled = unflatten(pool_flat)[:, :, 1:HP - 1:2, 1:WP - 1:2]     # (N, COUT, H//2, W//2)
    return down, pooled


def reference_forward(x, w1, b1, w2, b2, wi, bi):
    def conv(inp, w, b, pad):
        out = jax.lax.conv_general_dilated(
            inp, w, window_strides=(1, 1),
            padding=[(pad, pad), (pad, pad)],
            dimension_numbers=("NCHW", "OIHW", "NCHW"))
        return out + b.reshape(1, -1, 1, 1)

    ident = conv(x, wi, bi, 0)
    h = jax.nn.relu(conv(x, w1, b1, 1))
    down = jax.nn.relu(conv(h, w2, b2, 1) + ident)
    p = jax.lax.reduce_window(down, -jnp.inf, jax.lax.max,
                              (1, 1, 2, 2), (1, 1, 2, 2), "VALID")
    return down, p


if __name__ == "__main__":
    keys = jax.random.split(jax.random.PRNGKey(0), 7)
    x = jax.random.normal(keys[0], (N, CIN, H, W), jnp.float32)
    w1 = 0.2 * jax.random.normal(keys[1], (COUT, CIN, 3, 3), jnp.float32)
    b1 = 0.1 * jax.random.normal(keys[2], (COUT,), jnp.float32)
    w2 = 0.2 * jax.random.normal(keys[3], (COUT, COUT, 3, 3), jnp.float32)
    b2 = 0.1 * jax.random.normal(keys[4], (COUT,), jnp.float32)
    wi = 0.2 * jax.random.normal(keys[5], (COUT, CIN, 1, 1), jnp.float32)
    bi = 0.1 * jax.random.normal(keys[6], (COUT,), jnp.float32)

    down, p = downsample_forward(x, w1, b1, w2, b2, wi, bi)
    jax.block_until_ready((down, p))

    down_ref, p_ref = reference_forward(x, w1, b1, w2, b2, wi, bi)
    np.testing.assert_allclose(np.asarray(down), np.asarray(down_ref),
                               atol=1e-2, rtol=1e-2)
    np.testing.assert_allclose(np.asarray(p), np.asarray(p_ref),
                               atol=1e-2, rtol=1e-2)
    assert down.shape == (N, COUT, H, W)
    assert p.shape == (N, COUT, H // 2, W // 2)
    print("KERNEL_OK")
</pallas_src>

<mosaic_0001>
module attributes {stable_mosaic.version = 11 : i64} {
  func.func @double_conv_pool_kernel(%arg0: i32, %arg1: memref<8x768xf32, #tpu.memory_space<vmem>>, %arg2: memref<1x768xf32, #tpu.memory_space<vmem>>, %arg3: memref<8x72xf32, #tpu.memory_space<vmem>>, %arg4: memref<8x1xf32, #tpu.memory_space<vmem>>, %arg5: memref<8x80xf32, #tpu.memory_space<vmem>>, %arg6: memref<8x1xf32, #tpu.memory_space<vmem>>, %arg7: memref<8x768xf32, #tpu.memory_space<vmem>>, %arg8: memref<8x768xf32, #tpu.memory_space<vmem>>) attributes {dimension_semantics = [#tpu.dimension_semantics<arbitrary>], iteration_bounds = array<i64: 1>, scalar_prefetch = 0 : i64, scratch_operands = 0 : i64, tpu.core_type = #tpu.core_type<tc>, window_params = [{pipeline_mode = #tpu.pipeline_mode<synchronous>, transform_indices = @transform_0, window_bounds = array<i64: 8, 768>}, {pipeline_mode = #tpu.pipeline_mode<synchronous>, transform_indices = @transform_1, window_bounds = array<i64: 1, 768>}, {pipeline_mode = #tpu.pipeline_mode<synchronous>, transform_indices = @transform_2, window_bounds = array<i64: 8, 72>}, {pipeline_mode = #tpu.pipeline_mode<synchronous>, transform_indices = @transform_3, window_bounds = array<i64: 8, 1>}, {pipeline_mode = #tpu.pipeline_mode<synchronous>, transform_indices = @transform_4, window_bounds = array<i64: 8, 80>}, {pipeline_mode = #tpu.pipeline_mode<synchronous>, transform_indices = @transform_5, window_bounds = array<i64: 8, 1>}, {pipeline_mode = #tpu.pipeline_mode<synchronous>, transform_indices = @transform_6, window_bounds = array<i64: 8, 768>}, {pipeline_mode = #tpu.pipeline_mode<synchronous>, transform_indices = @transform_7, window_bounds = array<i64: 8, 768>}]} {
    %c0 = arith.constant 0 : index
    %c0_0 = arith.constant 0 : index
    %0 = vector.load %arg1[%c0, %c0_0] : memref<8x768xf32, #tpu.memory_space<vmem>>, vector<8x768xf32>
    %c0_1 = arith.constant 0 : index
    %c0_2 = arith.constant 0 : index
    %1 = vector.load %arg2[%c0_1, %c0_2] : memref<1x768xf32, #tpu.memory_space<vmem>>, vector<1x768xf32>
    %c19_i32 = arith.constant 19 : i32
    %2 = tpu.dynamic_rotate %0 by %c19_i32 dim 1 : vector<8x768xf32>, i32 -> vector<8x768xf32>
    %c18_i32 = arith.constant 18 : i32
    %3 = tpu.dynamic_rotate %0 by %c18_i32 dim 1 : vector<8x768xf32>, i32 -> vector<8x768xf32>
    %c17_i32 = arith.constant 17 : i32
    %4 = tpu.dynamic_rotate %0 by %c17_i32 dim 1 : vector<8x768xf32>, i32 -> vector<8x768xf32>
    %c1_i32 = arith.constant 1 : i32
    %5 = tpu.dynamic_rotate %0 by %c1_i32 dim 1 : vector<8x768xf32>, i32 -> vector<8x768xf32>
    %c767_i32 = arith.constant 767 : i32
    %6 = tpu.dynamic_rotate %0 by %c767_i32 dim 1 : vector<8x768xf32>, i32 -> vector<8x768xf32>
    %c751_i32 = arith.constant 751 : i32
    %7 = tpu.dynamic_rotate %0 by %c751_i32 dim 1 : vector<8x768xf32>, i32 -> vector<8x768xf32>
    %c750_i32 = arith.constant 750 : i32
    %8 = tpu.dynamic_rotate %0 by %c750_i32 dim 1 : vector<8x768xf32>, i32 -> vector<8x768xf32>
    %c749_i32 = arith.constant 749 : i32
    %9 = tpu.dynamic_rotate %0 by %c749_i32 dim 1 : vector<8x768xf32>, i32 -> vector<8x768xf32>
    %10 = tpu.concatenate %2, %3, %4, %5, %0, %6, %7, %8, %9 in 0 : vector<8x768xf32>, vector<8x768xf32>, vector<8x768xf32>, vector<8x768xf32>, vector<8x768xf32>, vector<8x768xf32>, vector<8x768xf32>, vector<8x768xf32>, vector<8x768xf32> -> vector<72x768xf32>
    %c0_3 = arith.constant 0 : index
    %c0_4 = arith.constant 0 : index
    %11 = vector.load %arg3[%c0_3, %c0_4] : memref<8x72xf32, #tpu.memory_space<vmem>>, vector<8x72xf32>
    %cst = arith.constant dense<0.000000e+00> : vector<8x768xf32>
    %12 = tpu.matmul %11, %10, %cst {dimension_numbers = #tpu.dot_dimension_numbers<[1], [0], [0], [1], [0, 0, 1, 1], [], []>} : vector<8x72xf32>, vector<72x768xf32>, vector<8x768xf32> -> vector<8x768xf32>
    %c0_5 = arith.constant 0 : index
    %c0_6 = arith.constant 0 : index
    %13 = vector.load %arg4[%c0_5, %c0_6] : memref<8x1xf32, #tpu.memory_space<vmem>>, vector<8x1xf32>
    %14 = vector.broadcast %13 : vector<8x1xf32> to vector<8x768xf32>
    %15 = arith.addf %12, %14 : vector<8x768xf32>
    %cst_7 = arith.constant 0.000000e+00 : f32
    %16 = vector.broadcast %cst_7 : f32 to vector<8x768xf32>
    %17 = arith.maximumf %15, %16 : vector<8x768xf32>
    %18 = vector.broadcast %1 : vector<1x768xf32> to vector<8x768xf32>
    %19 = arith.mulf %17, %18 : vector<8x768xf32>
    %c19_i32_8 = arith.constant 19 : i32
    %20 = tpu.dynamic_rotate %19 by %c19_i32_8 dim 1 : vector<8x768xf32>, i32 -> vector<8x768xf32>
    %c18_i32_9 = arith.constant 18 : i32
    %21 = tpu.dynamic_rotate %19 by %c18_i32_9 dim 1 : vector<8x768xf32>, i32 -> vector<8x768xf32>
    %c17_i32_10 = arith.constant 17 : i32
    %22 = tpu.dynamic_rotate %19 by %c17_i32_10 dim 1 : vector<8x768xf32>, i32 -> vector<8x768xf32>
    %c1_i32_11 = arith.constant 1 : i32
    %23 = tpu.dynamic_rotate %19 by %c1_i32_11 dim 1 : vector<8x768xf32>, i32 -> vector<8x768xf32>
    %c767_i32_12 = arith.constant 767 : i32
    %24 = tpu.dynamic_rotate %19 by %c767_i32_12 dim 1 : vector<8x768xf32>, i32 -> vector<8x768xf32>
    %c751_i32_13 = arith.constant 751 : i32
    %25 = tpu.dynamic_rotate %19 by %c751_i32_13 dim 1 : vector<8x768xf32>, i32 -> vector<8x768xf32>
    %c750_i32_14 = arith.constant 750 : i32
    %26 = tpu.dynamic_rotate %19 by %c750_i32_14 dim 1 : vector<8x768xf32>, i32 -> vector<8x768xf32>
    %c749_i32_15 = arith.constant 749 : i32
    %27 = tpu.dynamic_rotate %19 by %c749_i32_15 dim 1 : vector<8x768xf32>, i32 -> vector<8x768xf32>
    %28 = tpu.concatenate %20, %21, %22, %23, %19, %24, %25, %26, %27, %0 in 0 : vector<8x768xf32>, vector<8x768xf32>, vector<8x768xf32>, vector<8x768xf32>, vector<8x768xf32>, vector<8x768xf32>, vector<8x768xf32>, vector<8x768xf32>, vector<8x768xf32>, vector<8x768xf32> -> vector<80x768xf32>
    %c0_16 = arith.constant 0 : index
    %c0_17 = arith.constant 0 : index
    %29 = vector.load %arg5[%c0_16, %c0_17] : memref<8x80xf32, #tpu.memory_space<vmem>>, vector<8x80xf32>
    %cst_18 = arith.constant dense<0.000000e+00> : vector<8x768xf32>
    %30 = tpu.matmul %29, %28, %cst_18 {dimension_numbers = #tpu.dot_dimension_numbers<[1], [0], [0], [1], [0, 0, 1, 1], [], []>} : vector<8x80xf32>, vector<80x768xf32>, vector<8x768xf32> -> vector<8x768xf32>
    %c0_19 = arith.constant 0 : index
    %c0_20 = arith.constant 0 : index
    %31 = vector.load %arg6[%c0_19, %c0_20] : memref<8x1xf32, #tpu.memory_space<vmem>>, vector<8x1xf32>
    %32 = vector.broadcast %31 : vector<8x1xf32> to vector<8x768xf32>
    %33 = arith.addf %30, %32 : vector<8x768xf32>
    %cst_21 = arith.constant 0.000000e+00 : f32
    %34 = vector.broadcast %cst_21 : f32 to vector<8x768xf32>
    %35 = arith.maximumf %33, %34 : vector<8x768xf32>
    %c0_22 = arith.constant 0 : index
    %c0_23 = arith.constant 0 : index
    %36 = vector.load %arg7[%c0_22, %c0_23] : memref<8x768xf32, #tpu.memory_space<vmem>>, vector<8x768xf32>
    tpu.vector_store %arg7[%c0_22, %c0_23], %35 {strides = array<i32>} : memref<8x768xf32, #tpu.memory_space<vmem>>, vector<8x768xf32>,
    %c767_i32_24 = arith.constant 767 : i32
    %37 = tpu.dynamic_rotate %35 by %c767_i32_24 dim 1 : vector<8x768xf32>, i32 -> vector<8x768xf32>
    %c750_i32_25 = arith.constant 750 : i32
    %38 = tpu.dynamic_rotate %35 by %c750_i32_25 dim 1 : vector<8x768xf32>, i32 -> vector<8x768xf32>
    %c749_i32_26 = arith.constant 749 : i32
    %39 = tpu.dynamic_rotate %35 by %c749_i32_26 dim 1 : vector<8x768xf32>, i32 -> vector<8x768xf32>
    %40 = arith.maximumf %35, %37 : vector<8x768xf32>
    %41 = arith.maximumf %38, %39 : vector<8x768xf32>
    %42 = arith.maximumf %40, %41 : vector<8x768xf32>
    %c0_27 = arith.constant 0 : index
    %c0_28 = arith.constant 0 : index
    %43 = vector.load %arg8[%c0_27, %c0_28] : memref<8x768xf32, #tpu.memory_space<vmem>>, vector<8x768xf32>
    tpu.vector_store %arg8[%c0_27, %c0_28], %42 {strides = array<i32>} : memref<8x768xf32, #tpu.memory_space<vmem>>, vector<8x768xf32>,
    return
  }
  func.func @transform_0(%arg0: i32) -> (i32, i32) {
    %c0_i32 = arith.constant 0 : i32
    %c0_i32_0 = arith.constant 0 : i32
    %c0_i32_1 = arith.constant 0 : i32
    return %c0_i32, %c0_i32_0 : i32, i32
  }
  func.func @transform_1(%arg0: i32) -> (i32, i32) {
    %c0_i32 = arith.constant 0 : i32
    %c0_i32_0 = arith.constant 0 : i32
    %c0_i32_1 = arith.constant 0 : i32
    return %c0_i32, %c0_i32_0 : i32, i32
  }
  func.func @transform_2(%arg0: i32) -> (i32, i32) {
    %c0_i32 = arith.constant 0 : i32
    %c0_i32_0 = arith.constant 0 : i32
    %c0_i32_1 = arith.constant 0 : i32
    return %c0_i32, %c0_i32_0 : i32, i32
  }
  func.func @transform_3(%arg0: i32) -> (i32, i32) {
    %c0_i32 = arith.constant 0 : i32
    %c0_i32_0 = arith.constant 0 : i32
    %c0_i32_1 = arith.constant 0 : i32
    return %c0_i32, %c0_i32_0 : i32, i32
  }
  func.func @transform_4(%arg0: i32) -> (i32, i32) {
    %c0_i32 = arith.constant 0 : i32
    %c0_i32_0 = arith.constant 0 : i32
    %c0_i32_1 = arith.constant 0 : i32
    return %c0_i32, %c0_i32_0 : i32, i32
  }
  func.func @transform_5(%arg0: i32) -> (i32, i32) {
    %c0_i32 = arith.constant 0 : i32
    %c0_i32_0 = arith.constant 0 : i32
    %c0_i32_1 = arith.constant 0 : i32
    return %c0_i32, %c0_i32_0 : i32, i32
  }
  func.func @transform_6(%arg0: i32) -> (i32, i32) {
    %c0_i32 = arith.constant 0 : i32
    %c0_i32_0 = arith.constant 0 : i32
    %c0_i32_1 = arith.constant 0 : i32
    return %c0_i32, %c0_i32_0 : i32, i32
  }
  func.func @transform_7(%arg0: i32) -> (i32, i32) {
    %c0_i32 = arith.constant 0 : i32
    %c0_i32_0 = arith.constant 0 : i32
    %c0_i32_1 = arith.constant 0 : i32
    return %c0_i32, %c0_i32_0 : i32, i32
  }
}

</mosaic_0001>

<bundles_post_ra>
// kernel: downsample_forward.1
= control target key start
LH: loop header
LB: loop body
LE: loop exit
PB: predicated region body
PF: predicated region fallthrough
CT: control target
= control target key end

     0   :  { %s957_s9 = smov 111   ;;  %s958_s10 = smov 109   ;;  %v44_v12 = vlaneseq  ;;  %vm193_vm8 = vcmask 588800   ;;  %vm493_vm9 = vcmask 654336   ;;  %s1771_s0 = inlined_call_operand.vmem [shape: f32[8,768], index: 0, kind: input, shape index: {}]   ;;  %s1772_s3 = inlined_call_operand.vmem [shape: f32[8,1], index: 3, kind: input, shape index: {}]   ;;  %s1773_s2 = inlined_call_operand.vmem [shape: f32[8,72], index: 2, kind: input, shape index: {}]   ;;  %s1774_s1 = inlined_call_operand.vmem [shape: f32[1,768], index: 1, kind: input, shape index: {}]   ;;  %s1775_s5 = inlined_call_operand.vmem [shape: f32[8,1], index: 5, kind: input, shape index: {}]   ;;  %s1776_s4 = inlined_call_operand.vmem [shape: f32[8,80], index: 4, kind: input, shape index: {}]   ;;  %s1777_s6 = inlined_call_operand.vmem [shape: f32[8,768], index: 6, kind: output, shape index: {0}]   ;;  %s1778_s7 = inlined_call_operand.vmem [shape: f32[8,768], index: 7, kind: output, shape index: {1}]  }
   0x1   :  { %v1009_v0 = vld [vmem:[%s1771_s0 + $0x10] sm:$0xff]  ;;  %v1014_v1 = vld [vmem:[%s1771_s0 + $0x18] sm:$0xff]  ;;  %v1019_v2 = vld [vmem:[%s1771_s0] sm:$0xff]  ;;  %s959_s11 = smov 127   ;;  %s960_s12 = smov 110  }
   0x2   :  { %v746_v3 = vpack.i.bf16 %v1014_v1, %v1009_v0  ;;  %v1026_v4 = vld [vmem:[%s1771_s0 + $0x8] sm:$0xff]  ;;  %s961_s13 = smov 1   ;;  %s962_s14 = smov 17   ;;  %v1044_v7 = vld [vmem:[%s1771_s0 + $0x20] sm:$0xff]  ;;  %v1074_v14 = vand.u32 127, %v44_v12  ;;  %v965_v12 = vmov 0  }
   0x3   :  { %v756_v5 = vpack.i.bf16 %v1026_v4, %v1019_v2  ;;  %v766_v6 = vpack.i.bf16 %v1009_v0, %v1026_v4  ;;  %v1049_v8 = vld [vmem:[%s1771_s0 + $0x28] sm:$0xff]  ;;  %s963_s19 = smov 18   ;;  %s964_s20 = smov 19   ;;  %v836_v11 = vpack.i.bf16 %v1044_v7, %v1014_v1  ;;  %856 = vset.pattern.permute.xlu0 %v965_v12 }
   0x4   :  { %747 = vrot.lane.b32.xlu1 %v746_v3, %s957_s9  ;;  %737 = vrot.lane.b32.xlu0 %v746_v3, %s958_s10  ;;  %v791_v9 = vpack.i.bf16 %v1049_v8, %v1044_v7  ;;  %v801_v10 = vpack.i.bf16 %v1049_v8, %v1019_v2  ;;  %vm179_vm0 = vcmp.lt.s32.totalorder %v1074_v14, 109  ;;  %vm160_vm1 = vcmp.lt.s32.totalorder %v1074_v14, 110 }
   0x5   :  { %757 = vrot.lane.b32.xlu2 %v756_v5, %s958_s10  ;;  %vm141_vm2 = vcmp.lt.s32.totalorder %v1074_v14, 111  ;;  %vm122_vm3 = vcmp.lt.s32.totalorder %v1074_v14, 127  ;;  %vm103_vm4 = vcmp.lt.s32.totalorder %v1074_v14, 1  ;;  %vm84_vm5 = vcmp.lt.s32.totalorder %v1074_v14, 17 }
   0x6   :  { %vm65_vm6 = vcmp.lt.s32.totalorder %v1074_v14, 18  ;;  %vm46_vm7 = vcmp.lt.s32.totalorder %v1074_v14, 19 }
   0xc   :  { %752 = vrot.lane.b32.xlu1 %v746_v3, %s959_s11  ;;  %742 = vrot.lane.b32.xlu0 %v746_v3, %s960_s12 }
   0xd   :  { %762 = vrot.lane.b32.xlu2 %v756_v5, %s960_s12 }
  0x14   :  { %767 = vrot.lane.b32.xlu0 %v766_v6, %s961_s13  ;;  %772 = vrot.lane.b32.xlu1 %v756_v5, %s957_s9 }
  0x15   :  { %777 = vrot.lane.b32.xlu2 %v766_v6, %s962_s14 }
  0x1c   :  { %782 = vrot.lane.b32.xlu0 %v756_v5, %s959_s11  ;;  %787 = vrot.lane.b32.xlu1 %v766_v6, %s963_s19 }
  0x1d   :  { %792 = vrot.lane.b32.xlu2 %v791_v9, %s958_s10 }
  0x24   :  { %797 = vrot.lane.b32.xlu0 %v766_v6, %s964_s20  ;;  %802 = vrot.lane.b32.xlu1 %v801_v10, %s961_s13 }
  0x25   :  { %807 = vrot.lane.b32.xlu2 %v791_v9, %s960_s12 }
  0x2c   :  { %812 = vrot.lane.b32.xlu0 %v801_v10, %s962_s14  ;;  %817 = vrot.lane.b32.xlu1 %v791_v9, %s957_s9 }
  0x2d   :  { %822 = vrot.lane.b32.xlu2 %v801_v10, %s963_s19 }
  0x34   :  { %827 = vrot.lane.b32.xlu0 %v791_v9, %s959_s11  ;;  %832 = vrot.lane.b32.xlu1 %v801_v10, %s964_s20 }
  0x35   :  { %837 = vrot.lane.b32.xlu2 %v836_v11, %s961_s13 }
  0x3c   :  { %842 = vrot.lane.b32.xlu0 %v836_v11, %s962_s14  ;;  %847 = vrot.lane.b32.xlu1 %v836_v11, %s963_s19 }
  0x3d   :  { %852 = vrot.lane.b32.xlu2 %v836_v11, %s964_s20 }
  0x5f   :  { %v1072_v13 = vpop.permute.xlu2 %757 }
  0x60   :  { %v760_v15 = vunpack.i.h.bf16 %v1072_v13  ;;  %v759_v16 = vunpack.i.l.bf16 %v1072_v13 }
  0x62   :  { %v184_v17 = vsel %vm179_vm0, %v759_v16, %v760_v15 }
  0x63   :  { %204 = vmatpush.msra.mxu0 %v184_v17 }
  0x67   :  { %v1083_v18 = vpop.permute.xlu2 %762 }
  0x68   :  { %v765_v19 = vunpack.i.h.bf16 %v1083_v18  ;;  %v764_v20 = vunpack.i.l.bf16 %v1083_v18 }
  0x6a   :  { %v165_v21 = vsel %vm160_vm1, %v764_v20, %v765_v19 }
  0x6b   :  { %205 = vmatpush.msra.mxu0 %v165_v21 }
  0x6f   :  { %v1092_v22 = vpop.permute.xlu2 %777 }
  0x70   :  { %v780_v47 = vunpack.i.h.bf16 %v1092_v22  ;;  %v779_v48 = vunpack.i.l.bf16 %v1092_v22 }
  0x72   :  { %v88_v58 = vsel %vm84_vm5, %v779_v48, %v780_v47 }
  0x76   :  { %v1094_v23 = vpop.permute.xlu1 %747  ;;  %v738_v24 = vpop.permute.xlu0 %737 }
  0x77   :  { %v740_v25 = vunpack.i.h.bf16 %v738_v24  ;;  %v739_v26 = vunpack.i.l.bf16 %v738_v24  ;;  %v1096_v27 = vpop.permute.xlu2 %792  ;;  %v750_v34 = vunpack.i.h.bf16 %v1094_v23  ;;  %v749_v35 = vunpack.i.l.bf16 %v1094_v23  ;;  %v187_v24 = vld [vmem:[%s1772_s3] sm:$0xff] }
  0x78   :  { %v794_v28 = vunpack.i.l.bf16 %v1096_v27  ;;  %190 = vperm.xlu0 %856, %v187_v24  }
  0x79   :  { %v182_v29 = vsel %vm179_vm0, %v739_v26, %v740_v25  ;;  %v183_v30 = vsel %vm179_vm0, %v760_v15, %v739_v26  ;;  %v144_v45 = vsel %vm141_vm2, %v749_v35, %v750_v34 }
  0x7a   :  { %244 = vmatpush.msra.mxu2 %v182_v29  ;;  %224 = vmatpush.msra.mxu1 %v183_v30  ;;  %v181_v31 = vsel %vm179_vm0, %v740_v25, %v794_v28  ;;  %v1209_v30 = vld [vmem:[%s1773_s2] sm:$0xff] }
  0x7b   :  { %264 = vmatpush.msra.mxu3 %v181_v31 }
  0x7e   :  { %v1107_v32 = vpop.permute.xlu1 %752  ;;  %v743_v33 = vpop.permute.xlu0 %742 }
  0x7f   :  { %v745_v36 = vunpack.i.h.bf16 %v743_v33  ;;  %v744_v37 = vunpack.i.l.bf16 %v743_v33  ;;  %v1111_v38 = vpop.permute.xlu2 %807  ;;  %v755_v40 = vunpack.i.h.bf16 %v1107_v32  ;;  %v754_v41 = vunpack.i.l.bf16 %v1107_v32 }
  0x80   :  { %v809_v39 = vunpack.i.l.bf16 %v1111_v38 }
  0x81   :  { %v163_v42 = vsel %vm160_vm1, %v744_v37, %v745_v36  ;;  %v164_v43 = vsel %vm160_vm1, %v765_v19, %v744_v37  ;;  %v125_v46 = vsel %vm122_vm3, %v754_v41, %v755_v40 }
  0x82   :  { %245 = vmatpush.msra.mxu2 %v163_v42  ;;  %225 = vmatpush.msra.mxu1 %v164_v43  ;;  %v162_v44 = vsel %vm160_vm1, %v745_v36, %v809_v39 }
  0x83   :  { %265 = vmatpush.msra.mxu3 %v162_v44 }
  0x84   :  { %246 = vmatpush.msra.mxu2 %v144_v45 }
  0x86   :  { %247 = vmatpush.msra.mxu2 %v125_v46  ;;  %v1136_v49 = vpop.permute.xlu0 %767  ;;  %v1138_v50 = vpop.permute.xlu1 %772 }
  0x87   :  { %v770_v51 = vunpack.i.h.bf16 %v1136_v49  ;;  %v769_v52 = vunpack.i.l.bf16 %v1136_v49  ;;  %v775_v53 = vunpack.i.h.bf16 %v1138_v50  ;;  %v774_v54 = vunpack.i.l.bf16 %v1138_v50  ;;  %v1211_v31 = vpop.permute.xlu2 %822 }
  0x88   :  { %248 = vmatpush.msra.mxu2 %v1009_v0  ;;  %v825_v33 = vunpack.i.h.bf16 %v1211_v31  ;;  %v824_v37 = vunpack.i.l.bf16 %v1211_v31  ;;  %v31_v31 = vld [vmem:[%s1774_s1] sm:$0x3f] }
  0x89   :  { %v146_v55 = vsel %vm141_vm2, %v774_v54, %v775_v53  ;;  %v145_v56 = vsel %vm141_vm2, %v775_v53, %v749_v35  ;;  %v107_v57 = vsel %vm103_vm4, %v769_v52, %v770_v51 }
  0x8a   :  { %206 = vmatpush.msra.mxu0 %v146_v55  ;;  %226 = vmatpush.msra.mxu1 %v145_v56  ;;  %v71_v46 = vsel %vm65_vm6, %v825_v33, %v824_v37 }
  0x8b   :  { %249 = vmatpush.msra.mxu2 %v107_v57  ;;  %v795_v57 = vunpack.i.h.bf16 %v1096_v27 }
  0x8d   :  { %250 = vmatpush.msra.mxu2 %v88_v58  ;;  %v180_v12 = vsel %vm179_vm0, %v794_v28, %v795_v57  ;;  %v185_v32 = vsel %vm179_vm0, %v795_v57, %v759_v16 }
  0x8e   :  { %v1163_v59 = vpop.permute.xlu0 %782  ;;  %v1165_v60 = vpop.permute.xlu1 %787 }
  0x8f   :  { %v785_v61 = vunpack.i.h.bf16 %v1163_v59  ;;  %v784_v62 = vunpack.i.l.bf16 %v1163_v59  ;;  %v790_v63 = vunpack.i.h.bf16 %v1165_v60  ;;  %v789_v3 = vunpack.i.l.bf16 %v1165_v60  ;;  %v838_v23 = vpop.permute.xlu2 %837 }
  0x91   :  { %v126_v5 = vsel %vm122_vm3, %v785_v61, %v754_v41  ;;  %v69_v6 = vsel %vm65_vm6, %v789_v3, %v790_v63  ;;  %v127_v9 = vsel %vm122_vm3, %v784_v62, %v785_v61 }
  0x92   :  { %227 = vmatpush.msra.mxu1 %v126_v5  ;;  %251 = vmatpush.msra.mxu2 %v69_v6  ;;  %v810_v5 = vunpack.i.h.bf16 %v1111_v38  ;;  %v839_v6 = vunpack.i.l.bf16 %v838_v23 }
  0x93   :  { %207 = vmatpush.msra.mxu0 %v127_v9 }
  0x94   :  { %228 = vmatpush.msra.mxu1 %v1026_v4  ;;  %v161_v27 = vsel %vm160_vm1, %v809_v39, %v810_v5  ;;  %v166_v28 = vsel %vm160_vm1, %v810_v5, %v764_v20  ;;  %v106_v16 = vsel %vm103_vm4, %v770_v51, %v839_v6  ;;  %v329_v5 = vperm.slane %v31_v31, 5 }
  0x95   :  { %208 = vmatpush.msra.mxu0 %v1019_v2 }
  0x96   :  { %v1184_v10 = vpop.permute.xlu0 %797  ;;  %v1186_v11 = vpop.permute.xlu1 %802 }
  0x97   :  { %v800_v15 = vunpack.i.h.bf16 %v1184_v10  ;;  %v799_v17 = vunpack.i.l.bf16 %v1184_v10  ;;  %v805_v19 = vunpack.i.h.bf16 %v1186_v11  ;;  %v804_v21 = vunpack.i.l.bf16 %v1186_v11 }
  0x99   :  { %v109_v25 = vsel %vm103_vm4, %v805_v19, %v804_v21  ;;  %v108_v26 = vsel %vm103_vm4, %v804_v21, %v769_v52  ;;  %v50_v29 = vsel %vm46_vm7, %v799_v17, %v800_v15 }
  0x9a   :  { %209 = vmatpush.msra.mxu0 %v109_v25  ;;  %229 = vmatpush.msra.mxu1 %v108_v26  ;;  %v840_v25 = vunpack.i.h.bf16 %v838_v23 }
  0x9b   :  { %252 = vmatpush.msra.mxu2 %v50_v29 }
  0x9c   :  { %717 = vmatmul.msk.f32.vlgmr.msra.gmra.mxu2 %vm193_vm8, %v1209_v30 }
  0x9d   :  { %503 = vmatpush.msrb.mxu2 %v1019_v2 }
  0x9e   :  { %v1217_v35 = vpop.permute.xlu0 %812  ;;  %v818_v36 = vpop.permute.xlu1 %817 }
  0x9f   :  { %v815_v41 = vunpack.i.h.bf16 %v1217_v35  ;;  %v814_v42 = vunpack.i.l.bf16 %v1217_v35  ;;  %v819_v43 = vunpack.i.l.bf16 %v818_v36  ;;  %v820_v9 = vunpack.i.h.bf16 %v818_v36 }
  0xa0   :  { %v324_v36 = vperm.slane %v31_v31, 0 }
  0xa1   :  { %v89_v44 = vsel %vm84_vm5, %v814_v42, %v779_v48  ;;  %v143_v2 = vsel %vm141_vm2, %v750_v34, %v819_v43  ;;  %v90_v45 = vsel %vm84_vm5, %v815_v41, %v814_v42  ;;  %v70_v48 = vsel %vm65_vm6, %v824_v37, %v789_v3 }
  0xa2   :  { %230 = vmatpush.msra.mxu1 %v89_v44  ;;  %266 = vmatpush.msra.mxu3 %v143_v2  ;;  %v142_v39 = vsel %vm141_vm2, %v819_v43, %v820_v9  ;;  %v147_v18 = vsel %vm141_vm2, %v820_v9, %v774_v54  ;;  %v325_v42 = vperm.slane %v31_v31, 1 }
  0xa3   :  { %210 = vmatpush.msra.mxu0 %v90_v45 }
  0xa4   :  { %231 = vmatpush.msra.mxu1 %v70_v48 }
  0xa5   :  { %211 = vmatpush.msra.mxu0 %v71_v46 }
  0xa6   :  { %v828_v34 = vpop.permute.xlu0 %827  ;;  %v1240_v52 = vpop.permute.xlu1 %832 }
  0xa7   :  { %v829_v53 = vunpack.i.l.bf16 %v828_v34  ;;  %v835_v55 = vunpack.i.h.bf16 %v1240_v52  ;;  %v834_v56 = vunpack.i.l.bf16 %v1240_v52 }
  0xa9   :  { %v52_v58 = vsel %vm46_vm7, %v835_v55, %v834_v56  ;;  %v51_v61 = vsel %vm46_vm7, %v834_v56, %v799_v17  ;;  %v124_v3 = vsel %vm122_vm3, %v755_v40, %v829_v53  ;;  %v853_v40 = vpop.permute.xlu2 %852  ;;  %v830_v17 = vunpack.i.h.bf16 %v828_v34 }
  0xaa   :  { %212 = vmatpush.msra.mxu0 %v52_v58  ;;  %232 = vmatpush.msra.mxu1 %v51_v61  ;;  %v854_v20 = vunpack.i.l.bf16 %v853_v40  ;;  %v326_v34 = vperm.slane %v31_v31, 2 }
  0xab   :  { %267 = vmatpush.msra.mxu3 %v124_v3  ;;  %715 = vmatmul.msk.f32.vlgmr.msra.gmra.mxu0 %vm193_vm8, %v1209_v30  ;;  %v123_v49 = vsel %vm122_vm3, %v829_v53, %v830_v17  ;;  %v128_v50 = vsel %vm122_vm3, %v830_v17, %v784_v62  ;;  %v104_v62 = vsel %vm103_vm4, %v840_v25, %v805_v19  ;;  %v328_v53 = vperm.slane %v31_v31, 4 }
  0xac   :  { %716 = vmatmul.msk.f32.vlgmr.msra.gmra.mxu1 %vm193_vm8, %v1209_v30  ;;  %284 = vmatpush.msrb.mxu0 %v180_v12  ;;  %v49_v59 = vsel %vm46_vm7, %v800_v15, %v854_v20 }
  0xad   :  { %304 = vmatpush.msrb.mxu1 %v185_v32  ;;  %268 = vmatpush.msra.mxu3 %v1014_v1 }
  0xae   :  { %285 = vmatpush.msrb.mxu0 %v161_v27  ;;  %v843_v13 = vpop.permute.xlu0 %842  ;;  %v848_v21 = vpop.permute.xlu1 %847 }
  0xaf   :  { %305 = vmatpush.msrb.mxu1 %v166_v28  ;;  %v844_v24 = vunpack.i.l.bf16 %v843_v13  ;;  %v849_v38 = vunpack.i.l.bf16 %v848_v21  ;;  %269 = vmatpush.msra.mxu3 %v106_v16  ;;  %v845_v26 = vunpack.i.h.bf16 %v843_v13  ;;  %v850_v22 = vunpack.i.h.bf16 %v848_v21  ;;  %v487_v28 = vld [vmem:[%s1775_s5] sm:$0xff] }
  0xb0   :  { %286 = vmatpush.msrb.mxu0 %v142_v39 }
  0xb1   :  { %306 = vmatpush.msrb.mxu1 %v147_v18  ;;  %v87_v51 = vsel %vm84_vm5, %v780_v47, %v844_v24  ;;  %v68_v54 = vsel %vm65_vm6, %v790_v63, %v849_v38  ;;  %v105_v47 = vsel %vm103_vm4, %v839_v6, %v840_v25  ;;  %v86_v60 = vsel %vm84_vm5, %v844_v24, %v845_v26 }
  0xb2   :  { %287 = vmatpush.msrb.mxu0 %v123_v49  ;;  %270 = vmatpush.msra.mxu3 %v87_v51  ;;  %v855_v63 = vunpack.i.h.bf16 %v853_v40  ;;  %v67_v10 = vsel %vm65_vm6, %v849_v38, %v850_v22  ;;  %v85_v15 = vsel %vm84_vm5, %v845_v26, %v815_v41  ;;  %v66_v19 = vsel %vm65_vm6, %v850_v22, %v825_v33 }
  0xb3   :  { %307 = vmatpush.msrb.mxu1 %v128_v50  ;;  %v327_v6 = vperm.slane %v31_v31, 3 }
  0xb4   :  { %288 = vmatpush.msrb.mxu0 %v1044_v7  ;;  %271 = vmatpush.msra.mxu3 %v68_v54  ;;  %v48_v11 = vsel %vm46_vm7, %v854_v20, %v855_v63  ;;  %v47_v29 = vsel %vm46_vm7, %v855_v63, %v835_v55 }
  0xb5   :  { %308 = vmatpush.msrb.mxu1 %v1049_v8 }
  0xb6   :  { %289 = vmatpush.msrb.mxu0 %v105_v47  ;;  %272 = vmatpush.msra.mxu3 %v49_v59 }
  0xb7   :  { %309 = vmatpush.msrb.mxu1 %v104_v62  ;;  %718 = vmatmul.msk.f32.vlgmr.msra.gmra.mxu3 %vm193_vm8, %v1209_v30 }
  0xb8   :  { %290 = vmatpush.msrb.mxu0 %v86_v60  ;;  %523 = vmatpush.msrb.mxu3 %v1026_v4 }
  0xb9   :  { %310 = vmatpush.msrb.mxu1 %v85_v15 }
  0xba   :  { %291 = vmatpush.msrb.mxu0 %v67_v10 }
  0xbb   :  { %311 = vmatpush.msrb.mxu1 %v66_v19 }
  0xbc   :  { %292 = vmatpush.msrb.mxu0 %v48_v11 }
  0xbd   :  { %312 = vmatpush.msrb.mxu1 %v47_v29  ;;  %719 = vmatmul.msk.f32.vlgmr.msrb.gmra.mxu0 %vm193_vm8, %v1209_v30 }
  0xbe   :  { %720 = vmatmul.msk.f32.vlgmr.msrb.gmra.mxu1 %vm193_vm8, %v1209_v30  ;;  %543 = vmatpush.msra.mxu0 %v1009_v0 }
  0xbf   :  { %563 = vmatpush.msra.mxu1 %v1014_v1 }
  0xea   :  { %v191_v4 = vpop.permute.xlu0 %190 }
 0x11f   :  { %v254_v1 = vpop.f32.mrf.mxu2 }
 0x120   :  { %v255_v45 = vadd.f32 %v254_v1, %v191_v4 }
 0x122   :  { %v319_v23 = vmax.f32 %v255_v45, 0.0 }
 0x124   :  { %v1354_v61 = vmul.f32 %v326_v34, %v319_v23 }
 0x128   :  { %v214_v33 = vpop.f32.mrf.mxu0 }
 0x129   :  { %v215_v35 = vadd.f32 %v214_v33, %v191_v4  ;;  %v234_v37 = vpop.f32.mrf.mxu1 }
 0x12a   :  { %v235_v41 = vadd.f32 %v234_v37, %v191_v4 }
 0x12b   :  { %v317_v43 = vmax.f32 %v215_v35, 0.0 }
 0x12c   :  { %v318_v44 = vmax.f32 %v235_v41, 0.0 }
 0x12d   :  { %v1343_v2 = vmul.f32 %v324_v36, %v317_v43 }
 0x12e   :  { %v1345_v30 = vmul.f32 %v325_v42, %v318_v44 }
 0x130   :  { %v872_v0 = vpack.i.bf16 %v1345_v30, %v1343_v2 }
 0x132   :  { %873 = vrot.lane.b32.xlu2 %v872_v0, %s959_s11  ;;  %858 = vrot.lane.b32.xlu1 %v872_v0, %s958_s10 }
 0x133   :  { %868 = vrot.lane.b32.xlu0 %v872_v0, %s957_s9 }
 0x13a   :  { %v294_v46 = vpop.f32.mrf.mxu0  ;;  %878 = vrot.lane.b32.xlu2 %v872_v0, %s961_s13  ;;  %863 = vrot.lane.b32.xlu1 %v872_v0, %s960_s12  ;;  %v274_v48 = vpop.f32.mrf.mxu3 }
 0x13b   :  { %v295_v52 = vadd.f32 %v294_v46, %v191_v4  ;;  %v314_v55 = vpop.f32.mrf.mxu1  ;;  %v275_v58 = vadd.f32 %v274_v48, %v191_v4 }
 0x13c   :  { %v315_v57 = vadd.f32 %v314_v55, %v191_v4 }
 0x13d   :  { %v321_v56 = vmax.f32 %v295_v52, 0.0  ;;  %v320_v12 = vmax.f32 %v275_v58, 0.0 }
 0x13e   :  { %v322_v9 = vmax.f32 %v315_v57, 0.0 }
 0x13f   :  { %v1356_v3 = vmul.f32 %v328_v53, %v321_v56  ;;  %v1365_v27 = vmul.f32 %v327_v6, %v320_v12  ;;  %v1506_v6 = vld [vmem:[%s1776_s4] sm:$0xff] }
 0x140   :  { %v1363_v40 = vmul.f32 %v329_v5, %v322_v9 }
 0x141   :  { %v912_v32 = vpack.i.bf16 %v1356_v3, %v1354_v61 }
 0x142   :  { %883 = vrot.lane.b32.xlu2 %v872_v0, %s962_s14  ;;  %v922_v17 = vpack.i.bf16 %v1365_v27, %v1363_v40 }
 0x143   :  { %913 = vrot.lane.b32.xlu0 %v912_v32, %s959_s11  ;;  %908 = vrot.lane.b32.xlu1 %v912_v32, %s957_s9 }
 0x14a   :  { %888 = vrot.lane.b32.xlu2 %v872_v0, %s963_s19 }
 0x14b   :  { %923 = vrot.lane.b32.xlu0 %v922_v17, %s961_s13  ;;  %918 = vrot.lane.b32.xlu1 %v922_v17, %s958_s10 }
 0x152   :  { %893 = vrot.lane.b32.xlu2 %v912_v32, %s958_s10 }
 0x153   :  { %933 = vrot.lane.b32.xlu0 %v922_v17, %s962_s14  ;;  %928 = vrot.lane.b32.xlu1 %v922_v17, %s960_s12 }
 0x15a   :  { %898 = vrot.lane.b32.xlu2 %v912_v32, %s960_s12 }
 0x15b   :  { %943 = vrot.lane.b32.xlu0 %v922_v17, %s963_s19  ;;  %938 = vrot.lane.b32.xlu1 %v922_v17, %s957_s9 }
 0x162   :  { %903 = vrot.lane.b32.xlu2 %v872_v0, %s964_s20 }
 0x163   :  { %953 = vrot.lane.b32.xlu0 %v922_v17, %s964_s20  ;;  %948 = vrot.lane.b32.xlu1 %v922_v17, %s959_s11 }
 0x16a   :  { %386 = vrot.lane.b32.xlu2 %v1356_v3, %s962_s14 }
 0x16b   :  { %368 = vrot.lane.b32.xlu0 %v1356_v3, %s963_s19  ;;  %404 = vrot.lane.b32.xlu1 %v1356_v3, %s961_s13 }
 0x172   :  { %400 = vrot.lane.b32.xlu2 %v1354_v61, %s961_s13 }
 0x173   :  { %382 = vrot.lane.b32.xlu0 %v1354_v61, %s962_s14  ;;  %350 = vrot.lane.b32.xlu1 %v1356_v3, %s964_s20 }
 0x17a   :  { %346 = vrot.lane.b32.xlu2 %v1354_v61, %s964_s20 }
 0x17b   :  { %490 = vperm.xlu0 %856, %v487_v28   ;;  %364 = vrot.lane.b32.xlu1 %v1354_v61, %s963_s19 }
 0x18c   :  { %v1400_v13 = vpop.permute.xlu2 %873 }
 0x18d   :  { %v876_v59 = vunpack.i.h.bf16 %v1400_v13  ;;  %v875_v60 = vunpack.i.l.bf16 %v1400_v13 }
 0x18f   :  { %v430_v15 = vsel %vm122_vm3, %v875_v60, %v876_v59 }
 0x194   :  { %v1402_v21 = vpop.permute.xlu2 %878 }
 0x195   :  { %v881_v37 = vunpack.i.h.bf16 %v1402_v21  ;;  %v880_v41 = vunpack.i.l.bf16 %v1402_v21 }
 0x197   :  { %v412_v52 = vsel %vm103_vm4, %v880_v41, %v881_v37 }
 0x19c   :  { %v1404_v16 = vpop.permute.xlu2 %883 }
 0x19d   :  { %v886_v43 = vunpack.i.h.bf16 %v1404_v16  ;;  %v885_v44 = vunpack.i.l.bf16 %v1404_v16 }
 0x19f   :  { %v394_v58 = vsel %vm84_vm5, %v885_v44, %v886_v43 }
 0x1a4   :  { %v1406_v24 = vpop.permute.xlu2 %888  ;;  %v1408_v38 = vpop.permute.xlu1 %858 }
 0x1a5   :  { %v861_v39 = vunpack.i.h.bf16 %v1408_v38  ;;  %v860_v18 = vunpack.i.l.bf16 %v1408_v38  ;;  %v1416_v49 = vpop.permute.xlu0 %868  ;;  %v891_v23 = vunpack.i.h.bf16 %v1406_v24  ;;  %v890_v34 = vunpack.i.l.bf16 %v1406_v24 }
 0x1a6   :  { %v871_v51 = vunpack.i.h.bf16 %v1416_v49  ;;  %v870_v26 = vunpack.i.l.bf16 %v1416_v49 }
 0x1a7   :  { %v484_v20 = vsel %vm179_vm0, %v860_v18, %v861_v39  ;;  %v376_v5 = vsel %vm65_vm6, %v890_v34, %v891_v23 }
 0x1a8   :  { %504 = vmatpush.msrb.mxu2 %v484_v20  ;;  %v448_v10 = vsel %vm141_vm2, %v870_v26, %v871_v51 }
 0x1ac   :  { %v1419_v25 = vpop.permute.xlu2 %893  ;;  %v1421_v50 = vpop.permute.xlu1 %863 }
 0x1ad   :  { %v895_v54 = vunpack.i.l.bf16 %v1419_v25  ;;  %v866_v22 = vunpack.i.h.bf16 %v1421_v50  ;;  %v865_v47 = vunpack.i.l.bf16 %v1421_v50  ;;  %v896_v1 = vunpack.i.h.bf16 %v1419_v25 }
 0x1af   :  { %v466_v62 = vsel %vm160_vm1, %v865_v47, %v866_v22  ;;  %v483_v63 = vsel %vm179_vm0, %v861_v39, %v895_v54 }
 0x1b0   :  { %505 = vmatpush.msrb.mxu2 %v466_v62  ;;  %524 = vmatpush.msrb.mxu3 %v483_v63 }
 0x1b2   :  { %506 = vmatpush.msrb.mxu2 %v448_v10 }
 0x1b4   :  { %v1443_v11 = vpop.permute.xlu2 %898  ;;  %507 = vmatpush.msrb.mxu2 %v430_v15 }
 0x1b5   :  { %v900_v19 = vunpack.i.l.bf16 %v1443_v11  ;;  %v1446_v29 = vpop.permute.xlu0 %913  ;;  %v1448_v4 = vpop.permute.xlu1 %908  ;;  %v901_v28 = vunpack.i.h.bf16 %v1443_v11 }
 0x1b6   :  { %v910_v31 = vunpack.i.l.bf16 %v1448_v4  ;;  %508 = vmatpush.msrb.mxu2 %v1343_v2  ;;  %v915_v33 = vunpack.i.l.bf16 %v1446_v29  ;;  %v911_v15 = vunpack.i.h.bf16 %v1448_v4  ;;  %v916_v4 = vunpack.i.h.bf16 %v1446_v29 }
 0x1b7   :  { %v465_v35 = vsel %vm160_vm1, %v866_v22, %v900_v19 }
 0x1b8   :  { %525 = vmatpush.msrb.mxu3 %v465_v35  ;;  %v447_v36 = vsel %vm141_vm2, %v871_v51, %v910_v31  ;;  %v429_v42 = vsel %vm122_vm3, %v876_v59, %v915_v33 }
 0x1ba   :  { %526 = vmatpush.msrb.mxu3 %v447_v36 }
 0x1bc   :  { %527 = vmatpush.msrb.mxu3 %v429_v42  ;;  %v1472_v45 = vpop.permute.xlu2 %903 }
 0x1bd   :  { %v1467_v2 = vpop.permute.xlu0 %923  ;;  %v1469_v0 = vpop.permute.xlu1 %918  ;;  %v906_v56 = vunpack.i.h.bf16 %v1472_v45  ;;  %v905_v57 = vunpack.i.l.bf16 %v1472_v45 }
 0x1be   :  { %v925_v46 = vunpack.i.l.bf16 %v1467_v2  ;;  %v921_v48 = vunpack.i.h.bf16 %v1469_v0  ;;  %528 = vmatpush.msrb.mxu3 %v1345_v30  ;;  %v920_v9 = vunpack.i.l.bf16 %v1469_v0 }
 0x1bf   :  { %v358_v17 = vsel %vm46_vm7, %v905_v57, %v906_v56 }
 0x1c0   :  { %529 = vmatpush.msrb.mxu3 %v412_v52  ;;  %v413_v53 = vsel %vm103_vm4, %v925_v46, %v880_v41  ;;  %v482_v55 = vsel %vm179_vm0, %v895_v54, %v921_v48  ;;  %v481_v30 = vsel %vm179_vm0, %v921_v48, %v896_v1 }
 0x1c1   :  { %509 = vmatpush.msrb.mxu2 %v413_v53  ;;  %544 = vmatpush.msra.mxu0 %v482_v55  ;;  %v926_v55 = vunpack.i.h.bf16 %v1467_v2 }
 0x1c2   :  { %564 = vmatpush.msra.mxu1 %v481_v30  ;;  %530 = vmatpush.msrb.mxu3 %v394_v58 }
 0x1c4   :  { %531 = vmatpush.msrb.mxu3 %v376_v5  ;;  %v1546_v36 = vpop.permute.xlu2 %386 }
 0x1c5   :  { %v1509_v12 = vpop.permute.xlu0 %933  ;;  %v1511_v32 = vpop.permute.xlu1 %928 }
 0x1c6   :  { %v935_v39 = vunpack.i.l.bf16 %v1509_v12  ;;  %v931_v20 = vunpack.i.h.bf16 %v1511_v32  ;;  %532 = vmatpush.msrb.mxu3 %v358_v17  ;;  %v930_v51 = vunpack.i.l.bf16 %v1511_v32 }
 0x1c7   :  { %722 = vmatmul.msk.f32.vlgmr.msrb.gmra.mxu3 %vm493_vm9, %v1506_v6 }
 0x1c8   :  { %603 = vmatpush.msra.mxu3 %v1049_v8  ;;  %v395_v54 = vsel %vm84_vm5, %v935_v39, %v885_v44  ;;  %v464_v22 = vsel %vm160_vm1, %v900_v19, %v931_v20  ;;  %v463_v59 = vsel %vm160_vm1, %v931_v20, %v901_v28  ;;  %v485_v8 = vsel %vm179_vm0, %v920_v9, %v860_v18 }
 0x1c9   :  { %510 = vmatpush.msrb.mxu2 %v395_v54  ;;  %545 = vmatpush.msra.mxu0 %v464_v22  ;;  %v467_v62 = vsel %vm160_vm1, %v930_v51, %v865_v47 }
 0x1ca   :  { %565 = vmatpush.msra.mxu1 %v463_v59  ;;  %604 = vmatpush.msra.mxu3 %v485_v8 }
 0x1cc   :  { %605 = vmatpush.msra.mxu3 %v467_v62  ;;  %v401_v53 = vpop.permute.xlu2 %400 }
 0x1cd   :  { %v1542_v63 = vpop.permute.xlu0 %943  ;;  %v939_v10 = vpop.permute.xlu1 %938  ;;  %v411_v13 = vsel %vm103_vm4, %v881_v37, %v401_v53  ;;  %v936_v37 = vunpack.i.h.bf16 %v1509_v12 }
 0x1ce   :  { %v945_v19 = vunpack.i.l.bf16 %v1542_v63  ;;  %v941_v35 = vunpack.i.h.bf16 %v939_v10  ;;  %v940_v38 = vunpack.i.l.bf16 %v939_v10 }
 0x1cf   :  { %v391_v16 = vsel %vm84_vm5, %v936_v37, %v1546_v36 }
 0x1d0   :  { %v377_v18 = vsel %vm65_vm6, %v945_v19, %v890_v34  ;;  %v446_v50 = vsel %vm141_vm2, %v910_v31, %v941_v35  ;;  %v445_v47 = vsel %vm141_vm2, %v941_v35, %v911_v15  ;;  %v449_v41 = vsel %vm141_vm2, %v940_v38, %v870_v26 }
 0x1d1   :  { %511 = vmatpush.msrb.mxu2 %v377_v18  ;;  %546 = vmatpush.msra.mxu0 %v446_v50  ;;  %v444_v21 = vsel %vm141_vm2, %v911_v15, %v940_v38 }
 0x1d2   :  { %566 = vmatpush.msra.mxu1 %v445_v47  ;;  %606 = vmatpush.msra.mxu3 %v449_v41 }
 0x1d5   :  { %v1560_v42 = vpop.permute.xlu0 %953  ;;  %v949_v44 = vpop.permute.xlu1 %948 }
 0x1d6   :  { %v955_v0 = vunpack.i.l.bf16 %v1560_v42  ;;  %v951_v31 = vunpack.i.h.bf16 %v949_v44  ;;  %v950_v48 = vunpack.i.l.bf16 %v949_v44 }
 0x1d8   :  { %v359_v34 = vsel %vm46_vm7, %v955_v0, %v905_v57  ;;  %v428_v49 = vsel %vm122_vm3, %v915_v33, %v951_v31  ;;  %v427_v26 = vsel %vm122_vm3, %v951_v31, %v916_v4  ;;  %v431_v52 = vsel %vm122_vm3, %v950_v48, %v875_v60 }
 0x1d9   :  { %512 = vmatpush.msrb.mxu2 %v359_v34  ;;  %547 = vmatpush.msra.mxu0 %v428_v49  ;;  %v480_v60 = vsel %vm179_vm0, %v896_v1, %v920_v9  ;;  %v426_v11 = vsel %vm122_vm3, %v916_v4, %v950_v48  ;;  %v347_v9 = vpop.permute.xlu2 %346 }
 0x1da   :  { %567 = vmatpush.msra.mxu1 %v427_v26  ;;  %607 = vmatpush.msra.mxu3 %v431_v52 }
 0x1db   :  { %721 = vmatmul.msk.f32.vlgmr.msrb.gmra.mxu2 %vm493_vm9, %v1506_v6  ;;  %548 = vmatpush.msra.mxu0 %v1354_v61 }
 0x1dc   :  { %583 = vmatpush.msra.mxu2 %v1044_v7  ;;  %568 = vmatpush.msra.mxu1 %v1365_v27  ;;  %v410_v7 = vsel %vm103_vm4, %v401_v53, %v926_v55  ;;  %v390_v27 = vsel %vm84_vm5, %v1546_v36, %v935_v39  ;;  %v357_v39 = vsel %vm46_vm7, %v906_v56, %v347_v9 }
 0x1dd   :  { %608 = vmatpush.msra.mxu3 %v1363_v40  ;;  %v369_v29 = vpop.permute.xlu0 %368  ;;  %v405_v33 = vpop.permute.xlu1 %404  ;;  %549 = vmatpush.msra.mxu0 %v411_v13  ;;  %v462_v40 = vsel %vm160_vm1, %v901_v28, %v930_v51 }
 0x1de   :  { %584 = vmatpush.msra.mxu2 %v480_v60  ;;  %569 = vmatpush.msra.mxu1 %v410_v7  ;;  %v408_v61 = vsel %vm103_vm4, %v405_v33, %v925_v46  ;;  %v372_v25 = vsel %vm65_vm6, %v369_v29, %v945_v19  ;;  %v409_v58 = vsel %vm103_vm4, %v926_v55, %v405_v33 }
 0x1df   :  { %609 = vmatpush.msra.mxu3 %v408_v61 }
 0x1e0   :  { %585 = vmatpush.msra.mxu2 %v462_v40 }
 0x1e1   :  { %610 = vmatpush.msra.mxu3 %v390_v27 }
 0x1e2   :  { %586 = vmatpush.msra.mxu2 %v444_v21 }
 0x1e3   :  { %611 = vmatpush.msra.mxu3 %v372_v25 }
 0x1e4   :  { %587 = vmatpush.msra.mxu2 %v426_v11 }
 0x1e5   :  { %v383_v2 = vpop.permute.xlu0 %382  ;;  %v351_v1 = vpop.permute.xlu1 %350 }
 0x1e6   :  { %588 = vmatpush.msra.mxu2 %v1356_v3  ;;  %v393_v46 = vsel %vm84_vm5, %v886_v43, %v383_v2  ;;  %v392_v30 = vsel %vm84_vm5, %v383_v2, %v936_v37  ;;  %v354_v57 = vsel %vm46_vm7, %v351_v1, %v955_v0  ;;  %v946_v3 = vunpack.i.h.bf16 %v1542_v63 }
 0x1e7   :  { %550 = vmatpush.msra.mxu0 %v393_v46  ;;  %570 = vmatpush.msra.mxu1 %v392_v30  ;;  %v956_v43 = vunpack.i.h.bf16 %v1560_v42 }
 0x1e8   :  { %589 = vmatpush.msra.mxu2 %v409_v58  ;;  %612 = vmatpush.msra.mxu3 %v354_v57  ;;  %v373_v5 = vsel %vm65_vm6, %v946_v3, %v369_v29 }
 0x1e9   :  { %726 = vmatmul.msk.f32.vlgmr.msra.gmra.mxu3 %vm493_vm9, %v1506_v6  ;;  %v355_v12 = vsel %vm46_vm7, %v956_v43, %v351_v1  ;;  %v356_v24 = vsel %vm46_vm7, %v347_v9, %v956_v43 }
 0x1ea   :  { %590 = vmatpush.msra.mxu2 %v391_v16 }
 0x1ec   :  { %591 = vmatpush.msra.mxu2 %v373_v5 }
 0x1ed   :  { %v365_v32 = vpop.permute.xlu1 %364 }
 0x1ee   :  { %592 = vmatpush.msra.mxu2 %v355_v12  ;;  %v375_v17 = vsel %vm65_vm6, %v891_v23, %v365_v32  ;;  %v374_v28 = vsel %vm65_vm6, %v365_v32, %v946_v3  ;;  %v491_v23 = vpop.permute.xlu0 %490 }
 0x1ef   :  { %725 = vmatmul.msk.f32.vlgmr.msra.gmra.mxu2 %vm493_vm9, %v1506_v6  ;;  %551 = vmatpush.msra.mxu0 %v375_v17 }
 0x1f0   :  { %571 = vmatpush.msra.mxu1 %v374_v28 }
 0x1f1   :  { %552 = vmatpush.msra.mxu0 %v357_v39 }
 0x1f2   :  { %572 = vmatpush.msra.mxu1 %v356_v24  ;;  %723 = vmatmul.msk.f32.vlgmr.msra.gmra.mxu0 %vm493_vm9, %v1506_v6 }
 0x1f3   :  { %724 = vmatmul.msk.f32.vlgmr.msra.gmra.mxu1 %vm493_vm9, %v1506_v6 }
 0x24a   :  { %v534_v20 = vpop.f32.mrf.mxu3 }
 0x24b   :  { %v535_v51 = vadd.f32 %v534_v20, %v491_v23 }
 0x24d   :  { %v1653_v54 = vmax.f32 %v535_v51, 0.0 }
 0x24f   :  { %624 = vst [vmem:[%s1777_s6 + $0x8] sm:$0xff] %v1653_v54  ;;  %631 = vrot.lane.b32.xlu2 %v1653_v54, %s959_s11 }
 0x257   :  { %649 = vrot.lane.b32.xlu2 %v1653_v54, %s960_s12 }
 0x25e   :  { %v514_v45 = vpop.f32.mrf.mxu2 }
 0x25f   :  { %v515_v56 = vadd.f32 %v514_v45, %v491_v23  ;;  %667 = vrot.lane.b32.xlu2 %v1653_v54, %s958_s10 }
 0x261   :  { %v617_v6 = vmax.f32 %v515_v56, 0.0 }
 0x263   :  { %623 = vst [vmem:[%s1777_s6] sm:$0xff] %v617_v6  ;;  %629 = vrot.lane.b32.xlu1 %v617_v6, %s959_s11 }
 0x26b   :  { %647 = vrot.lane.b32.xlu1 %v617_v6, %s960_s12 }
 0x26c   :  { %v614_v22 = vpop.f32.mrf.mxu3 }
 0x26d   :  { %v615_v59 = vadd.f32 %v614_v22, %v491_v23 }
 0x26f   :  { %v1670_v8 = vmax.f32 %v615_v59, 0.0  ;;  %v554_v62 = vpop.f32.mrf.mxu0 }
 0x270   :  { %v555_v63 = vadd.f32 %v554_v62, %v491_v23  ;;  %v574_v10 = vpop.f32.mrf.mxu1 }
 0x271   :  { %628 = vst [vmem:[%s1777_s6 + $0x28] sm:$0xff] %v1670_v8  ;;  %v575_v15 = vadd.f32 %v574_v10, %v491_v23 }
 0x272   :  { %v1676_v19 = vmax.f32 %v555_v63, 0.0  ;;  %v594_v35 = vpop.f32.mrf.mxu2 }
 0x273   :  { %v620_v38 = vmax.f32 %v575_v15, 0.0  ;;  %v595_v36 = vadd.f32 %v594_v35, %v491_v23  ;;  %665 = vrot.lane.b32.xlu1 %v617_v6, %s958_s10 }
 0x274   :  { %625 = vst [vmem:[%s1777_s6 + $0x10] sm:$0xff] %v1676_v19  ;;  %633 = vrot.lane.b32.xlu0 %v1676_v19, %s959_s11 }
 0x275   :  { %626 = vst [vmem:[%s1777_s6 + $0x18] sm:$0xff] %v620_v38  ;;  %v1688_v18 = vmax.f32 %v595_v36, 0.0 }
 0x277   :  { %627 = vst [vmem:[%s1777_s6 + $0x20] sm:$0xff] %v1688_v18  ;;  %637 = vrot.lane.b32.xlu2 %v1688_v18, %s959_s11 }
 0x27b   :  { %635 = vrot.lane.b32.xlu1 %v620_v38, %s959_s11 }
 0x27c   :  { %651 = vrot.lane.b32.xlu0 %v1676_v19, %s960_s12 }
 0x27f   :  { %655 = vrot.lane.b32.xlu2 %v1688_v18, %s960_s12 }
 0x283   :  { %653 = vrot.lane.b32.xlu1 %v620_v38, %s960_s12 }
 0x284   :  { %669 = vrot.lane.b32.xlu0 %v1676_v19, %s958_s10 }
 0x287   :  { %673 = vrot.lane.b32.xlu2 %v1688_v18, %s958_s10 }
 0x28b   :  { %671 = vrot.lane.b32.xlu1 %v620_v38, %s958_s10 }
 0x28c   :  { %639 = vrot.lane.b32.xlu0 %v1670_v8, %s959_s11 }
 0x294   :  { %657 = vrot.lane.b32.xlu0 %v1670_v8, %s960_s12 }
 0x29c   :  { %675 = vrot.lane.b32.xlu0 %v1670_v8, %s958_s10 }
 0x2a9   :  { %v632_v50 = vpop.permute.xlu2 %631 }
 0x2b1   :  { %v650_v41 = vpop.permute.xlu2 %649 }
 0x2b9   :  { %v668_v44 = vpop.permute.xlu2 %667 }
 0x2d1   :  { %v638_v52 = vpop.permute.xlu2 %637 }
 0x2d5   :  { %v630_v47 = vpop.permute.xlu1 %629 }
 0x2d6   :  { %v645_v4 = vsel %vm122_vm3, %v630_v47, %v632_v50 }
 0x2d7   :  { %v683_v49 = vmax.f32 %v617_v6, %v645_v4 }
 0x2d9   :  { %v656_v60 = vpop.permute.xlu2 %655 }
 0x2dd   :  { %v648_v42 = vpop.permute.xlu1 %647 }
 0x2de   :  { %v663_v31 = vsel %vm160_vm1, %v648_v42, %v650_v41 }
 0x2e1   :  { %v674_v2 = vpop.permute.xlu2 %673 }
 0x2e5   :  { %v666_v0 = vpop.permute.xlu1 %665 }
 0x2e6   :  { %v681_v48 = vsel %vm179_vm0, %v666_v0, %v668_v44  ;;  %v634_v34 = vpop.permute.xlu0 %633 }
 0x2e7   :  { %v689_v26 = vmax.f32 %v663_v31, %v681_v48  ;;  %v644_v29 = vsel %vm122_vm3, %v632_v50, %v634_v34 }
 0x2e8   :  { %v684_v27 = vmax.f32 %v1653_v54, %v644_v29 }
 0x2e9   :  { %v695_v53 = vmax.f32 %v683_v49, %v689_v26 }
 0x2eb   :  { %701 = vst [vmem:[%s1778_s7] sm:$0xff] %v695_v53 }
 0x2ed   :  { %v636_v55 = vpop.permute.xlu1 %635 }
 0x2ee   :  { %v652_v13 = vpop.permute.xlu0 %651  ;;  %v642_v11 = vsel %vm122_vm3, %v636_v55, %v638_v52  ;;  %v643_v37 = vsel %vm122_vm3, %v634_v34, %v636_v55 }
 0x2ef   :  { %v662_v61 = vsel %vm160_vm1, %v650_v41, %v652_v13  ;;  %v685_v16 = vmax.f32 %v1676_v19, %v643_v37  ;;  %v686_v43 = vmax.f32 %v620_v38, %v642_v11 }
 0x2f5   :  { %v654_v33 = vpop.permute.xlu1 %653 }
 0x2f6   :  { %v670_v7 = vpop.permute.xlu0 %669  ;;  %v660_v46 = vsel %vm160_vm1, %v654_v33, %v656_v60  ;;  %v661_v30 = vsel %vm160_vm1, %v652_v13, %v654_v33 }
 0x2f7   :  { %v680_v40 = vsel %vm179_vm0, %v668_v44, %v670_v7 }
 0x2f8   :  { %v690_v21 = vmax.f32 %v662_v61, %v680_v40 }
 0x2fa   :  { %v696_v25 = vmax.f32 %v684_v27, %v690_v21 }
 0x2fc   :  { %702 = vst [vmem:[%s1778_s7 + $0x8] sm:$0xff] %v696_v25 }
 0x2fd   :  { %v672_v1 = vpop.permute.xlu1 %671 }
 0x2fe   :  { %v678_v57 = vsel %vm179_vm0, %v672_v1, %v674_v2  ;;  %v679_v58 = vsel %vm179_vm0, %v670_v7, %v672_v1  ;;  %v640_v3 = vpop.permute.xlu0 %639 }
 0x2ff   :  { %v691_v5 = vmax.f32 %v661_v30, %v679_v58  ;;  %v692_v9 = vmax.f32 %v660_v46, %v678_v57  ;;  %v641_v28 = vsel %vm122_vm3, %v638_v52, %v640_v3  ;;  %v646_v39 = vsel %vm122_vm3, %v640_v3, %v630_v47 }
 0x300   :  { %v687_v45 = vmax.f32 %v1688_v18, %v641_v28  ;;  %v688_v56 = vmax.f32 %v1670_v8, %v646_v39 }
 0x301   :  { %v697_v12 = vmax.f32 %v685_v16, %v691_v5  ;;  %v698_v32 = vmax.f32 %v686_v43, %v692_v9 }
 0x303   :  { %703 = vst [vmem:[%s1778_s7 + $0x10] sm:$0xff] %v697_v12 }
 0x304   :  { %704 = vst [vmem:[%s1778_s7 + $0x18] sm:$0xff] %v698_v32 }
 0x306   :  { %v658_v17 = vpop.permute.xlu0 %657 }
 0x307   :  { %v659_v23 = vsel %vm160_vm1, %v656_v60, %v658_v17  ;;  %v664_v20 = vsel %vm160_vm1, %v658_v17, %v648_v42 }
 0x30e   :  { %v676_v24 = vpop.permute.xlu0 %675 }
 0x30f   :  { %v677_v51 = vsel %vm179_vm0, %v674_v2, %v676_v24  ;;  %v682_v54 = vsel %vm179_vm0, %v676_v24, %v666_v0 }
 0x310   :  { %v693_v6 = vmax.f32 %v659_v23, %v677_v51  ;;  %v694_v22 = vmax.f32 %v664_v20, %v682_v54 }
 0x312   :  { %v699_v59 = vmax.f32 %v687_v45, %v693_v6  ;;  %v700_v62 = vmax.f32 %v688_v56, %v694_v22 }
 0x314   :  { %705 = vst [vmem:[%s1778_s7 + $0x20] sm:$0xff] %v699_v59 }
 0x315   :  { %706 = vst [vmem:[%s1778_s7 + $0x28] sm:$0xff] %v700_v62 }

</bundles_post_ra>
